<compile_context>
chip_gen: v5e
topology: v5e:2x2
jax: 0.10.0
libtpu: 0.0.40
codegen_flags: <defaults>
</compile_context>

<pallas_src>
import functools

import jax
import jax.numpy as jnp
from jax.experimental import pallas as pl
from jax.experimental.pallas import tpu as pltpu

_LANE = 128
_TM, _TN, _TK = 512, 512, 512  # tile targets; safe on v5e/v6e/v7x VMEM budgets


def _round_up(x, m):
    return ((x + m - 1) // m) * m


def _sublane(dtype):
    # minimum second-minor tile per dtype packing (f32:8, bf16:16, int8/fp8:32)
    return {4: 8, 2: 16, 1: 32}.get(jnp.dtype(dtype).itemsize, 8)


def _matmul_kernel(lhs_ref, rhs_ref, out_ref, acc_ref):
    @pl.when(pl.program_id(2) == 0)
    def _init():
        acc_ref[...] = jnp.zeros_like(acc_ref)

    acc_ref[...] += jnp.dot(
        lhs_ref[...], rhs_ref[...], preferred_element_type=jnp.float32
    )

    @pl.when(pl.program_id(2) == pl.num_programs(2) - 1)
    def _store():
        out_ref[...] = acc_ref[...].astype(out_ref.dtype)


@functools.partial(jax.jit, static_argnames=("alias_lhs",))
def _pallas_matmul(lhs, rhs, alias_lhs=False):
    M, K = lhs.shape
    K2, N = rhs.shape
    if K != K2:
        raise ValueError(f"contraction mismatch: {lhs.shape} @ {rhs.shape}")
    out_dtype = jnp.result_type(lhs.dtype, rhs.dtype)

    # Tile sizes: full (rounded-up) dim when small, else the 512 targets.
    tm = min(_TM, _round_up(M, _sublane(out_dtype)))
    tk = min(_TK, _round_up(K, _LANE))
    tn = min(_TN, _round_up(N, _LANE))

    Mp, Kp, Np = _round_up(M, tm), _round_up(K, tk), _round_up(N, tn)
    lhs_p = lhs if (Mp, Kp) == (M, K) else jnp.pad(lhs, ((0, Mp - M), (0, Kp - K)))
    rhs_p = rhs if (Kp, Np) == (K, N) else jnp.pad(rhs, ((0, Kp - K), (0, Np - N)))

    grid = (Mp // tm, Np // tn, Kp // tk)

    extra = {}
    # In-place aliasing is only safe when the output never overwrites data the
    # kernel still needs to read: single N tile, matching padded shape/dtype.
    if (
        alias_lhs
        and lhs_p.dtype == out_dtype
        and Kp == Np
        and grid[1] == 1
    ):
        extra["input_output_aliases"] = {0: 0}

    itemsize = jnp.dtype(out_dtype).itemsize
    out = pl.pallas_call(
        _matmul_kernel,
        out_shape=jax.ShapeDtypeStruct((Mp, Np), out_dtype),
        grid_spec=pltpu.PrefetchScalarGridSpec(
            num_scalar_prefetch=0,
            grid=grid,
            in_specs=[
                pl.BlockSpec((tm, tk), lambda i, j, k: (i, k)),
                pl.BlockSpec((tk, tn), lambda i, j, k: (k, j)),
            ],
            out_specs=pl.BlockSpec((tm, tn), lambda i, j, k: (i, j)),
            scratch_shapes=[pltpu.VMEM((tm, tn), jnp.float32)],
        ),
        compiler_params=pltpu.CompilerParams(
            dimension_semantics=("parallel", "parallel", "arbitrary"),
            vmem_limit_bytes=32 * 1024 * 1024,
        ),
        cost_estimate=pl.CostEstimate(
            flops=2 * M * N * K,
            transcendentals=0,
            bytes_accessed=(M * K + K * N + M * N) * itemsize,
        ),
        **extra,
    )(lhs_p, rhs_p)

    if (Mp, Np) != (M, N):
        out = out[:M, :N]
    return out


class Matmul:
    """JAX/Pallas port of the PyTorch `Matmul(TensorOpBlock)` module."""

    inplace = True

    def __init__(self, weight_shape, dtype, order, key):
        self.order = order
        self.dtype = dtype
        # PyTorch uses torch.empty (uninitialized); use deterministic normal.
        self.a = jax.random.normal(key, tuple(weight_shape), dtype=dtype)

    def __call__(self, inputs):
        if self.order == "pre":
            return _pallas_matmul(self.a, inputs)
        elif self.order == "post":
            return _pallas_matmul(inputs, self.a)
        elif self.order == "inplace":
            # JAX arrays are immutable; aliasing the activation buffer to the
            # output reproduces the "in-place" storage behaviour.
            return _pallas_matmul(inputs, self.a, alias_lhs=True)
        else:
            raise NotImplementedError(
                "undefined order {} for {}".format(self.order, self)
            )


if __name__ == "__main__":
    key = jax.random.PRNGKey(0)
    k_w, k_x, k_a2, k_b2 = jax.random.split(key, 4)

    ok = True

    # --- small-shape checks matching the module's implied forward ---
    seq, hidden = 8, 32
    weight_shape = (hidden, hidden)
    x = jax.random.normal(k_x, (seq, hidden), dtype=jnp.float32)

    for order in ("pre", "post", "inplace"):
        mod = Matmul(weight_shape, jnp.float32, order, k_w)
        if order == "pre":
            inp = x.T  # a @ inputs requires (hidden, seq)-shaped inputs
            ref = jnp.matmul(mod.a, inp, precision=jax.lax.Precision.HIGHEST)
        else:
            inp = x
            ref = jnp.matmul(inp, mod.a, precision=jax.lax.Precision.HIGHEST)
        out = mod(inp)
        jax.block_until_ready(out)
        if out.shape != ref.shape or not jnp.allclose(out, ref, atol=1e-3, rtol=1e-3):
            ok = False
            print(f"MISMATCH for order={order}")

    # --- larger check exercising the multi-block (i, j, k) grid + accumulator ---
    A = jax.random.normal(k_a2, (640, 768), dtype=jnp.float32)
    B = jax.random.normal(k_b2, (768, 640), dtype=jnp.float32)
    out_big = _pallas_matmul(A, B)
    jax.block_until_ready(out_big)
    ref_big = jnp.matmul(A, B, precision=jax.lax.Precision.HIGHEST)
    if out_big.shape != ref_big.shape or not jnp.allclose(
        out_big, ref_big, atol=1e-2, rtol=1e-3
    ):
        ok = False
        print("MISMATCH for tiled-grid matmul")

    if ok:
        print("KERNEL_OK")
</pallas_src>

<mosaic_0001>
module attributes {stable_mosaic.version = 11 : i64} {
  func.func @_matmul_kernel(%arg0: i32, %arg1: i32, %arg2: i32, %arg3: memref<32x128xf32, #tpu.memory_space<vmem>>, %arg4: memref<128x128xf32, #tpu.memory_space<vmem>>, %arg5: memref<32x128xf32, #tpu.memory_space<vmem>>, %arg6: memref<32x128xf32, #tpu.memory_space<vmem>>) attributes {dimension_semantics = [#tpu.dimension_semantics<parallel>, #tpu.dimension_semantics<parallel>, #tpu.dimension_semantics<arbitrary>], iteration_bounds = array<i64: 1, 1, 1>, scalar_prefetch = 0 : i64, scratch_operands = 1 : i64, tpu.core_type = #tpu.core_type<tc>, window_params = [{transform_indices = @transform_0, window_bounds = array<i64: 32, 128>}, {transform_indices = @transform_1, window_bounds = array<i64: 128, 128>}, {transform_indices = @transform_2, window_bounds = array<i64: 32, 128>}]} {
    %c0_i32 = arith.constant 0 : i32
    %0 = arith.cmpi eq, %arg2, %c0_i32 : i32
    %1 = arith.extui %0 : i1 to i32
    %c0_i32_0 = arith.constant 0 : i32
    %2 = arith.cmpi ne, %1, %c0_i32_0 : i32
    scf.if %2 {
      %cst_10 = arith.constant 0.000000e+00 : f32
      %12 = vector.broadcast %cst_10 : f32 to vector<32x128xf32>
      %c0_11 = arith.constant 0 : index
      %c0_12 = arith.constant 0 : index
      %13 = vector.load %arg6[%c0_11, %c0_12] : memref<32x128xf32, #tpu.memory_space<vmem>>, vector<32x128xf32>
      tpu.vector_store %arg6[%c0_11, %c0_12], %12 {strides = array<i32>} : memref<32x128xf32, #tpu.memory_space<vmem>>, vector<32x128xf32>,
    } else {
    }
    %c0 = arith.constant 0 : index
    %c0_1 = arith.constant 0 : index
    %3 = vector.load %arg6[%c0, %c0_1] : memref<32x128xf32, #tpu.memory_space<vmem>>, vector<32x128xf32>
    %c0_2 = arith.constant 0 : index
    %c0_3 = arith.constant 0 : index
    %4 = vector.load %arg3[%c0_2, %c0_3] : memref<32x128xf32, #tpu.memory_space<vmem>>, vector<32x128xf32>
    %c0_4 = arith.constant 0 : index
    %c0_5 = arith.constant 0 : index
    %5 = vector.load %arg4[%c0_4, %c0_5] : memref<128x128xf32, #tpu.memory_space<vmem>>, vector<128x128xf32>
    %cst = arith.constant dense<0.000000e+00> : vector<32x128xf32>
    %6 = tpu.matmul %4, %5, %cst {dimension_numbers = #tpu.dot_dimension_numbers<[1], [0], [0], [1], [0, 0, 1, 1], [], []>} : vector<32x128xf32>, vector<128x128xf32>, vector<32x128xf32> -> vector<32x128xf32>
    %7 = arith.addf %3, %6 : vector<32x128xf32>
    %c0_6 = arith.constant 0 : index
    %c0_7 = arith.constant 0 : index
    %8 = vector.load %arg6[%c0_6, %c0_7] : memref<32x128xf32, #tpu.memory_space<vmem>>, vector<32x128xf32>
    tpu.vector_store %arg6[%c0_6, %c0_7], %7 {strides = array<i32>} : memref<32x128xf32, #tpu.memory_space<vmem>>, vector<32x128xf32>,
    %c0_i32_8 = arith.constant 0 : i32
    %9 = arith.cmpi eq, %arg2, %c0_i32_8 : i32
    %10 = arith.extui %9 : i1 to i32
    %c0_i32_9 = arith.constant 0 : i32
    %11 = arith.cmpi ne, %10, %c0_i32_9 : i32
    scf.if %11 {
      %c0_10 = arith.constant 0 : index
      %c0_11 = arith.constant 0 : index
      %12 = vector.load %arg6[%c0_10, %c0_11] : memref<32x128xf32, #tpu.memory_space<vmem>>, vector<32x128xf32>
      %c0_12 = arith.constant 0 : index
      %c0_13 = arith.constant 0 : index
      %13 = vector.load %arg5[%c0_12, %c0_13] : memref<32x128xf32, #tpu.memory_space<vmem>>, vector<32x128xf32>
      tpu.vector_store %arg5[%c0_12, %c0_13], %12 {strides = array<i32>} : memref<32x128xf32, #tpu.memory_space<vmem>>, vector<32x128xf32>,
    } else {
    }
    return
  }
  func.func @transform_0(%arg0: i32, %arg1: i32, %arg2: i32) -> (i32, i32) {
    %c0_i32 = arith.constant 0 : i32
    return %arg0, %arg2 : i32, i32
  }
  func.func @transform_1(%arg0: i32, %arg1: i32, %arg2: i32) -> (i32, i32) {
    %c0_i32 = arith.constant 0 : i32
    return %arg2, %arg1 : i32, i32
  }
  func.func @transform_2(%arg0: i32, %arg1: i32, %arg2: i32) -> (i32, i32) {
    %c0_i32 = arith.constant 0 : i32
    return %arg0, %arg1 : i32, i32
  }
}

</mosaic_0001>

<bundles_post_ra>
// kernel: _pallas_matmul.1
= control target key start
LH: loop header
LB: loop body
LE: loop exit
PB: predicated region body
PF: predicated region fallthrough
CT: control target
= control target key end

     0   :  { %s230_s1 = inlined_call_operand.vmem [shape: f32[128,128], index: 1, kind: input, shape index: {}]   ;;  %s231_s0 = inlined_call_operand.vmem [shape: f32[32,128], index: 0, kind: input, shape index: {}]   ;;  %s232_s2 = inlined_call_operand.vmem [shape: f32[32,128], index: 2, kind: output, shape index: {}]  }
   0x1   :  { %v42_v0 = vld [vmem:[%s230_s1 + $0x78] sm:$0xff]  ;;  %v41_v1 = vld [vmem:[%s230_s1 + $0x70] sm:$0xff]  ;;  %v40_v2 = vld [vmem:[%s230_s1 + $0x68] sm:$0xff] }
   0x2   :  { %96 = vmatpush.msra.mxu2 %v42_v0  ;;  %97 = vmatpush.msra.mxu3 %v42_v0  ;;  %v39_v3 = vld [vmem:[%s230_s1 + $0x60] sm:$0xff]  ;;  %v38_v4 = vld [vmem:[%s230_s1 + $0x58] sm:$0xff]  ;;  %v37_v5 = vld [vmem:[%s230_s1 + $0x50] sm:$0xff] }
   0x3   :  { %43 = vmatpush.msra.mxu0 %v42_v0  ;;  %95 = vmatpush.msra.mxu1 %v42_v0  ;;  %v36_v6 = vld [vmem:[%s230_s1 + $0x48] sm:$0xff]  ;;  %v35_v7 = vld [vmem:[%s230_s1 + $0x40] sm:$0xff]  ;;  %v34_v8 = vld [vmem:[%s230_s1 + $0x38] sm:$0xff] }
   0x4   :  { %99 = vmatpush.msra.mxu2 %v41_v1  ;;  %100 = vmatpush.msra.mxu3 %v41_v1  ;;  %v33_v9 = vld [vmem:[%s230_s1 + $0x30] sm:$0xff]  ;;  %v32_v10 = vld [vmem:[%s230_s1 + $0x28] sm:$0xff]  ;;  %v31_v11 = vld [vmem:[%s230_s1 + $0x20] sm:$0xff] }
   0x5   :  { %44 = vmatpush.msra.mxu0 %v41_v1  ;;  %98 = vmatpush.msra.mxu1 %v41_v1  ;;  %v30_v12 = vld [vmem:[%s230_s1 + $0x18] sm:$0xff]  ;;  %v29_v13 = vld [vmem:[%s230_s1 + $0x10] sm:$0xff]  ;;  %v28_v14 = vld [vmem:[%s230_s1 + $0x8] sm:$0xff] }
   0x6   :  { %102 = vmatpush.msra.mxu2 %v40_v2  ;;  %103 = vmatpush.msra.mxu3 %v40_v2  ;;  %v27_v15 = vld [vmem:[%s230_s1] sm:$0xff]  ;;  %v25_v16 = vld [vmem:[%s231_s0 + $0x10] sm:$0xff]  ;;  %v26_v17 = vld [vmem:[%s231_s0 + $0x18] sm:$0xff] }
   0x7   :  { %45 = vmatpush.msra.mxu0 %v40_v2  ;;  %101 = vmatpush.msra.mxu1 %v40_v2  ;;  %v23_v18 = vld [vmem:[%s231_s0] sm:$0xff]  ;;  %v24_v19 = vld [vmem:[%s231_s0 + $0x8] sm:$0xff] }
   0x8   :  { %105 = vmatpush.msra.mxu2 %v39_v3  ;;  %106 = vmatpush.msra.mxu3 %v39_v3 }
   0x9   :  { %46 = vmatpush.msra.mxu0 %v39_v3  ;;  %104 = vmatpush.msra.mxu1 %v39_v3 }
   0xa   :  { %108 = vmatpush.msra.mxu2 %v38_v4  ;;  %109 = vmatpush.msra.mxu3 %v38_v4 }
   0xb   :  { %47 = vmatpush.msra.mxu0 %v38_v4  ;;  %107 = vmatpush.msra.mxu1 %v38_v4 }
   0xc   :  { %111 = vmatpush.msra.mxu2 %v37_v5  ;;  %112 = vmatpush.msra.mxu3 %v37_v5 }
   0xd   :  { %48 = vmatpush.msra.mxu0 %v37_v5  ;;  %110 = vmatpush.msra.mxu1 %v37_v5 }
   0xe   :  { %114 = vmatpush.msra.mxu2 %v36_v6  ;;  %115 = vmatpush.msra.mxu3 %v36_v6 }
   0xf   :  { %49 = vmatpush.msra.mxu0 %v36_v6  ;;  %113 = vmatpush.msra.mxu1 %v36_v6 }
  0x10   :  { %117 = vmatpush.msra.mxu2 %v35_v7  ;;  %118 = vmatpush.msra.mxu3 %v35_v7 }
  0x11   :  { %50 = vmatpush.msra.mxu0 %v35_v7  ;;  %116 = vmatpush.msra.mxu1 %v35_v7 }
  0x12   :  { %120 = vmatpush.msra.mxu2 %v34_v8  ;;  %121 = vmatpush.msra.mxu3 %v34_v8 }
  0x13   :  { %51 = vmatpush.msra.mxu0 %v34_v8  ;;  %119 = vmatpush.msra.mxu1 %v34_v8 }
  0x14   :  { %123 = vmatpush.msra.mxu2 %v33_v9  ;;  %124 = vmatpush.msra.mxu3 %v33_v9 }
  0x15   :  { %52 = vmatpush.msra.mxu0 %v33_v9  ;;  %122 = vmatpush.msra.mxu1 %v33_v9 }
  0x16   :  { %126 = vmatpush.msra.mxu2 %v32_v10  ;;  %127 = vmatpush.msra.mxu3 %v32_v10 }
  0x17   :  { %53 = vmatpush.msra.mxu0 %v32_v10  ;;  %125 = vmatpush.msra.mxu1 %v32_v10 }
  0x18   :  { %129 = vmatpush.msra.mxu2 %v31_v11  ;;  %130 = vmatpush.msra.mxu3 %v31_v11 }
  0x19   :  { %54 = vmatpush.msra.mxu0 %v31_v11  ;;  %128 = vmatpush.msra.mxu1 %v31_v11 }
  0x1a   :  { %132 = vmatpush.msra.mxu2 %v30_v12  ;;  %133 = vmatpush.msra.mxu3 %v30_v12 }
  0x1b   :  { %55 = vmatpush.msra.mxu0 %v30_v12  ;;  %131 = vmatpush.msra.mxu1 %v30_v12 }
  0x1c   :  { %135 = vmatpush.msra.mxu2 %v29_v13  ;;  %136 = vmatpush.msra.mxu3 %v29_v13 }
  0x1d   :  { %56 = vmatpush.msra.mxu0 %v29_v13  ;;  %134 = vmatpush.msra.mxu1 %v29_v13 }
  0x1e   :  { %138 = vmatpush.msra.mxu2 %v28_v14  ;;  %139 = vmatpush.msra.mxu3 %v28_v14 }
  0x1f   :  { %57 = vmatpush.msra.mxu0 %v28_v14  ;;  %137 = vmatpush.msra.mxu1 %v28_v14 }
  0x20   :  { %141 = vmatpush.msra.mxu2 %v27_v15  ;;  %142 = vmatpush.msra.mxu3 %v27_v15 }
  0x21   :  { %65 = vmatmul.f32.vlgmr.msra.gmra.mxu2 %v25_v16  ;;  %68 = vmatmul.f32.vlgmr.msra.gmra.mxu3 %v26_v17 }
  0x22   :  { %58 = vmatpush.msra.mxu0 %v27_v15  ;;  %140 = vmatpush.msra.mxu1 %v27_v15 }
  0x23   :  { %59 = vmatmul.f32.vlgmr.msra.gmra.mxu0 %v23_v18  ;;  %62 = vmatmul.f32.vlgmr.msra.gmra.mxu1 %v24_v19 }
  0xa0   :  { %v60_v20 = vpop.f32.mrf.mxu0  ;;  %v63_v21 = vpop.f32.mrf.mxu1 }
  0xa1   :  { %87 = vst [vmem:[%s232_s2] sm:$0xff] %v60_v20 }
  0xa2   :  { %88 = vst [vmem:[%s232_s2 + $0x8] sm:$0xff] %v63_v21 }
  0xa4   :  { %v66_v22 = vpop.f32.mrf.mxu2  ;;  %v69_v23 = vpop.f32.mrf.mxu3 }
  0xa5   :  { %89 = vst [vmem:[%s232_s2 + $0x10] sm:$0xff] %v66_v22 }
  0xa6   :  { %90 = vst [vmem:[%s232_s2 + $0x18] sm:$0xff] %v69_v23 }

</bundles_post_ra>
